<compile_context>
chip_gen: v7x
topology: tpu7x:2x2x1
jax: 0.10.0
libtpu: 0.0.40
codegen_flags: <defaults>
</compile_context>

<pallas_src>
import math

import numpy as np
import jax
import jax.numpy as jnp
from jax import lax
from jax.experimental import pallas as pl
from jax.experimental.pallas import tpu as pltpu


# Whether pipeline_mode=pl.Buffered(1) (single-buffering of the constant
# weight/bias blocks) is supported here.  Flipped to False on first failure and
# the call is retried with plain double-buffered specs, so an unsupported
# pipeline_mode can never break the kernel.
_CONST_SINGLE_BUFFER_OK = [True]


def _const_block_spec(shape, single_buffer):
    """BlockSpec for a grid-invariant operand (constant index_map)."""
    rank = len(shape)

    def index_map(n, t):
        return (0,) * rank

    if single_buffer:
        return pl.BlockSpec(shape, index_map, pipeline_mode=pl.Buffered(1))
    return pl.BlockSpec(shape, index_map)


# ------------------------------ Pallas kernel --------------------------------

def _make_soft_split_kernel(kh, sh, t_lh, Lw, Lw_pad, hidden):
    """Fused unfold + Linear over one t_lh-row strip of one frame per step."""
    M = t_lh * Lw_pad

    def kernel(x_ref, w_ref, b_ref, o_ref, acc_ref):
        # x_ref  : (Hq, sh, Lw_pad, kw*C)  kw-folded space-to-depth frame (VMEM resident)
        # w_ref  : (kh, kw*C, hidden)      per-kernel-row weight slabs (resident)
        # b_ref  : (1, hidden)             f32 bias (resident)
        # o_ref  : (t_lh, Lw, hidden)      output strip for this grid step
        # acc_ref: (t_lh*Lw_pad, hidden)   f32 VMEM accumulator scratch
        L0 = pl.multiple_of(pl.program_id(1) * t_lh, t_lh)
        for i in range(kh):                            # kh is small (3 toy / 7 prod)
            dh, rh = i // sh, i % sh
            slab = x_ref[pl.ds(L0 + dh, t_lh), rh]     # (t_lh, Lw_pad, kw*C)
            slab = slab.reshape(M, slab.shape[-1])     # free sublane merge
            contrib = jnp.dot(slab, w_ref[i],
                              preferred_element_type=jnp.float32)
            if i == 0:
                # bias-initialised accumulator: replaces zero-init + final add.
                acc_ref[...] = contrib + b_ref[...]
            else:
                acc_ref[...] += contrib
        acc = acc_ref[...].reshape(t_lh, Lw_pad, hidden)
        o_ref[...] = acc[:, :Lw, :].astype(o_ref.dtype)   # drop Lw padding cols

    return kernel


# ------------------------------ strip sizing ---------------------------------

def _pick_t_lh(Lh, Lw_pad, requested):
    """Pick the strip height.  Never silently falls back to the whole frame."""
    divisors = [d for d in range(1, Lh + 1) if Lh % d == 0]
    if requested is not None:
        # Honor the request, rounded DOWN to the nearest divisor of Lh.
        return max(d for d in divisors if d <= max(1, requested))
    # Auto: smallest strip giving a reasonably full MXU M dimension (>= 256
    # rows) while keeping >= 2 strips per frame so the next frame's DMA and the
    # output writeback have something to overlap with.
    for d in divisors:
        if d * Lw_pad >= 256 and Lh // d >= 2:
            return d
    multi = [d for d in divisors if Lh // d >= 2]
    return max(multi) if multi else Lh


# ------------------------------ SoftSplit ------------------------------------

def soft_split(x, b, w_emb, b_emb, kernel_size, stride, padding, *,
               t_lh=None, compute_dtype=jnp.bfloat16, out_dtype=None):
    """x: (b*T, C, H, W) NCHW -> (b, T*L, hidden).

    compute_dtype: MXU operand dtype (default bf16, f32 accumulation).
    out_dtype: output dtype (default: x.dtype, i.e. exact module semantics).
    """
    N, C, H, W = x.shape
    kh, kw = kernel_size
    sh, sw = stride
    ph, pw = padding
    hidden = w_emb.shape[1]
    assert w_emb.shape[0] == C * kh * kw

    if compute_dtype is None:
        compute_dtype = x.dtype
    if out_dtype is None:
        out_dtype = x.dtype

    Hp, Wp = H + 2 * ph, W + 2 * pw
    Lh = (Hp - kh) // sh + 1
    Lw = (Wp - kw) // sw + 1
    Hq = pl.cdiv(Hp, sh)
    KwC = kw * C

    # Sublane granule of the compute dtype -> free (t_lh, Lw_pad, K)->(M, K) reshape.
    isz_c = jnp.dtype(compute_dtype).itemsize
    sub = 8 * max(1, 4 // isz_c)
    Lw_pad = ((Lw + sub - 1) // sub) * sub

    t_lh = _pick_t_lh(Lh, Lw_pad, t_lh)
    n_strips = Lh // t_lh
    M = t_lh * Lw_pad

    # ---- wrapper relayout: pad + space-to-depth(h) + kw-fold pack ----------
    # y[n, qh, rh, lw, j*C + c] = x_pad[n, c, qh*sh + rh, lw*sw + j]
    # (~kw/sw x |x| bytes; bakes the column taps into the lane axis so the
    #  kernel never does a misaligned sublane slice and contracts over K=kw*C.)
    x_c = x.astype(compute_dtype)
    H_tot = Hq * sh
    W_need = (Lw_pad - 1) * sw + kw
    W_tot = max(W_need, Wp)
    x_pad = jnp.pad(x_c, ((0, 0), (0, 0),
                          (ph, H_tot - H - ph), (pw, W_tot - W - pw)))
    cols = [lax.slice(x_pad, (0, 0, 0, j),
                      (N, C, H_tot, j + (Lw_pad - 1) * sw + 1),
                      (1, 1, 1, sw))
            for j in range(kw)]                       # each (N, C, H_tot, Lw_pad)
    y = jnp.stack(cols, axis=1)                       # (N, kw, C, H_tot, Lw_pad)
    y = y.transpose(0, 3, 4, 1, 2)                    # (N, H_tot, Lw_pad, kw, C)
    y = y.reshape(N, Hq, sh, Lw_pad, KwC)

    # Per-kernel-row weight slabs (PyTorch Unfold column order is (C, kh, kw)):
    # w_r[i, j*C + c, h] == w_emb[(c*kh + i)*kw + j, h]
    w_r = (w_emb.reshape(C, kh, kw, hidden)
                .transpose(1, 2, 0, 3)
                .reshape(kh, KwC, hidden)
                .astype(compute_dtype))
    b_r = b_emb.reshape(1, hidden).astype(jnp.float32)

    kernel = _make_soft_split_kernel(kh, sh, t_lh, Lw, Lw_pad, hidden)

    # ---- explicit VMEM budget (per TensorCore) ------------------------------
    isz_o = jnp.dtype(out_dtype).itemsize
    frame_b = Hq * sh * Lw_pad * KwC * isz_c          # resident packed frame
    w_b = kh * KwC * hidden * isz_c
    bias_b = hidden * 4
    out_b = t_lh * Lw * hidden * isz_o
    acc_b = M * hidden * 4

    def _run(single_buffer_consts):
        const_bufs = 1 if single_buffer_consts else 2
        need = 2 * frame_b + const_bufs * (w_b + bias_b) + 2 * out_b + acc_b
        vmem_limit = int(min(max(int(need * 1.4) + (4 << 20), 32 << 20), 64 << 20))
        return pl.pallas_call(
            kernel,
            out_shape=jax.ShapeDtypeStruct((N, Lh, Lw, hidden), out_dtype),
            grid=(N, n_strips),
            in_specs=[
                # Whole packed frame: index_map ignores the strip axis so it is
                # DMA'd once per frame and stays VMEM resident across strips.
                pl.BlockSpec((None, Hq, sh, Lw_pad, KwC),
                             lambda n, t: (n, 0, 0, 0, 0)),
                _const_block_spec((kh, KwC, hidden), single_buffer_consts),
                _const_block_spec((1, hidden), single_buffer_consts),
            ],
            # Lane-dense output (hidden last); disjoint block per grid step.
            out_specs=pl.BlockSpec((None, t_lh, Lw, hidden),
                                   lambda n, t: (n, t, 0, 0)),
            scratch_shapes=[pltpu.VMEM((M, hidden), jnp.float32)],
            compiler_params=pltpu.CompilerParams(
                dimension_semantics=("parallel", "parallel"),
                vmem_limit_bytes=vmem_limit),
            cost_estimate=pl.CostEstimate(
                flops=2 * N * Lh * Lw_pad * KwC * kh * hidden,
                transcendentals=0,
                bytes_accessed=(y.size * isz_c + w_r.size * isz_c + b_r.size * 4
                                + N * Lh * Lw * hidden * isz_o)),
        )(y, w_r, b_r)

    if _CONST_SINGLE_BUFFER_OK[0]:
        try:
            out = _run(True)
        except Exception:
            _CONST_SINGLE_BUFFER_OK[0] = False
            out = _run(False)
    else:
        out = _run(False)

    # Free row-major collapse: (N, Lh, Lw, hidden) -> (b, T*L, hidden)
    feat = out.reshape(b, -1, hidden)
    # TODO(synk): nn.Dropout(p=0.1) omitted — identity in eval/inference mode.
    return feat


# --------------------------- plain-JAX reference -----------------------------

def _unfold_reference(x, kernel_size, stride, padding):
    """PyTorch nn.Unfold -> (N*L, C*kh*kw) with PyTorch (C, kh, kw) column order."""
    N, C, H, W = x.shape
    kh, kw = kernel_size
    sh, sw = stride
    ph, pw = padding
    x_pad = jnp.pad(x, ((0, 0), (0, 0), (ph, ph), (pw, pw)))
    Lh = (H + 2 * ph - kh) // sh + 1
    Lw = (W + 2 * pw - kw) // sw + 1
    rows = []
    for i in range(kh):
        cols = []
        for j in range(kw):
            sl = lax.slice(
                x_pad,
                (0, 0, i, j),
                (N, C, i + sh * (Lh - 1) + 1, j + sw * (Lw - 1) + 1),
                (1, 1, sh, sw),
            )
            cols.append(sl)
        rows.append(jnp.stack(cols, axis=2))
    patches = jnp.stack(rows, axis=2)                 # (N, C, kh, kw, Lh, Lw)
    patches = patches.transpose(0, 4, 5, 1, 2, 3)     # (N, Lh, Lw, C, kh, kw)
    return patches.reshape(N * Lh * Lw, C * kh * kw)


def _reference_soft_split(x, b, w_emb, b_emb, kernel_size, stride, padding):
    hidden = w_emb.shape[1]
    xmat = _unfold_reference(x, kernel_size, stride, padding)
    return (xmat @ w_emb + b_emb).reshape(b, -1, hidden)


# ---------------------------------- main --------------------------------------

if __name__ == "__main__":
    # Module config (small, consistent with the PyTorch module).
    channel = 4
    hidden = 32
    kernel_size = (3, 3)
    stride = (2, 2)
    padding = (1, 1)

    b = 2            # batch
    T = 2            # frames per batch element
    H = W = 16

    c_in = channel * kernel_size[0] * kernel_size[1]     # 36

    key = jax.random.PRNGKey(0)
    kx, kwt, kb = jax.random.split(key, 3)

    # x is (b*T, C, H, W) NCHW, matching the PyTorch forward(x, b) convention.
    x = jax.random.normal(kx, (b * T, channel, H, W), dtype=jnp.float32)

    # Linear(c_in, hidden) params kept as (c_in, hidden) for the matmul.
    bound = 1.0 / math.sqrt(c_in)
    w_emb = jax.random.uniform(kwt, (c_in, hidden), jnp.float32, -bound, bound)
    b_emb = jax.random.uniform(kb, (hidden,), jnp.float32, -bound, bound)

    ref = _reference_soft_split(x, b, w_emb, b_emb, kernel_size, stride, padding)

    # Exact-semantics path: f32 operands, explicit strip size.
    out_f32 = soft_split(x, b, w_emb, b_emb, kernel_size, stride, padding,
                         t_lh=4, compute_dtype=jnp.float32)
    out_f32 = jax.block_until_ready(out_f32)
    assert out_f32.shape == ref.shape, (out_f32.shape, ref.shape)
    np.testing.assert_allclose(np.asarray(out_f32), np.asarray(ref),
                               rtol=1e-5, atol=1e-5)

    # Default path: bf16 MXU operands, f32 accumulation/output, auto strip size.
    out_bf16 = soft_split(x, b, w_emb, b_emb, kernel_size, stride, padding)
    out_bf16 = jax.block_until_ready(out_bf16)
    assert out_bf16.shape == ref.shape, (out_bf16.shape, ref.shape)
    np.testing.assert_allclose(np.asarray(out_bf16, dtype=np.float32),
                               np.asarray(ref), rtol=3e-2, atol=3e-2)

    print("KERNEL_OK")
</pallas_src>

<mosaic_0001>
module attributes {stable_mosaic.version = 11 : i64} {
  func.func @kernel(%arg0: i32, %arg1: i32, %arg2: memref<1x9x2x8x12xf32, #tpu.memory_space<vmem>>, %arg3: memref<3x12x32xf32, #tpu.memory_space<vmem>>, %arg4: memref<1x32xf32, #tpu.memory_space<vmem>>, %arg5: memref<1x4x8x32xf32, #tpu.memory_space<vmem>>, %arg6: memref<32x32xf32, #tpu.memory_space<vmem>>) attributes {dimension_semantics = [#tpu.dimension_semantics<parallel>, #tpu.dimension_semantics<parallel>], iteration_bounds = array<i64: 4, 2>, scalar_prefetch = 0 : i64, scratch_operands = 1 : i64, tpu.core_type = #tpu.core_type<tc>, window_params = [{transform_indices = @transform_0, window_bounds = array<i64: 1, 9, 2, 8, 12>}, {pipeline_mode = #tpu.pipeline_mode<synchronous>, transform_indices = @transform_1, window_bounds = array<i64: 3, 12, 32>}, {pipeline_mode = #tpu.pipeline_mode<synchronous>, transform_indices = @transform_2, window_bounds = array<i64: 1, 32>}, {transform_indices = @transform_3, window_bounds = array<i64: 1, 4, 8, 32>}]} {
    %c4_i32 = arith.constant 4 : i32
    %0 = arith.muli %arg1, %c4_i32 : i32
    %1 = tpu.assume_multiple %0, 4 : i32
    %c0_i32 = arith.constant 0 : i32
    %2 = arith.addi %1, %c0_i32 : i32
    %c0 = arith.constant 0 : index
    %3 = arith.index_cast %2 : i32 to index
    %c0_0 = arith.constant 0 : index
    %c0_1 = arith.constant 0 : index
    %c0_2 = arith.constant 0 : index
    %4 = vector.load %arg2[%c0, %3, %c0_0, %c0_1, %c0_2] : memref<1x9x2x8x12xf32, #tpu.memory_space<vmem>>, vector<1x4x1x8x12xf32>
    %5 = vector.shape_cast %4 : vector<1x4x1x8x12xf32> to vector<4x8x12xf32>
    %6 = vector.shape_cast %5 : vector<4x8x12xf32> to vector<32x12xf32>
    %c0_3 = arith.constant 0 : index
    %c0_4 = arith.constant 0 : index
    %c0_5 = arith.constant 0 : index
    %7 = vector.load %arg3[%c0_3, %c0_4, %c0_5] : memref<3x12x32xf32, #tpu.memory_space<vmem>>, vector<1x12x32xf32>
    %8 = vector.shape_cast %7 : vector<1x12x32xf32> to vector<12x32xf32>
    %cst = arith.constant dense<0.000000e+00> : vector<32x32xf32>
    %9 = tpu.matmul %6, %8, %cst {dimension_numbers = #tpu.dot_dimension_numbers<[1], [0], [0], [1], [0, 0, 1, 1], [], []>} : vector<32x12xf32>, vector<12x32xf32>, vector<32x32xf32> -> vector<32x32xf32>
    %c0_6 = arith.constant 0 : index
    %c0_7 = arith.constant 0 : index
    %10 = vector.load %arg4[%c0_6, %c0_7] : memref<1x32xf32, #tpu.memory_space<vmem>>, vector<1x32xf32>
    %11 = vector.broadcast %10 : vector<1x32xf32> to vector<32x32xf32>
    %12 = arith.addf %9, %11 : vector<32x32xf32>
    %c0_8 = arith.constant 0 : index
    %c0_9 = arith.constant 0 : index
    %13 = vector.load %arg6[%c0_8, %c0_9] : memref<32x32xf32, #tpu.memory_space<vmem>>, vector<32x32xf32>
    tpu.vector_store %arg6[%c0_8, %c0_9], %12 {strides = array<i32>} : memref<32x32xf32, #tpu.memory_space<vmem>>, vector<32x32xf32>,
    %c0_i32_10 = arith.constant 0 : i32
    %14 = arith.addi %1, %c0_i32_10 : i32
    %c0_11 = arith.constant 0 : index
    %15 = arith.index_cast %14 : i32 to index
    %c1 = arith.constant 1 : index
    %c0_12 = arith.constant 0 : index
    %c0_13 = arith.constant 0 : index
    %16 = vector.load %arg2[%c0_11, %15, %c1, %c0_12, %c0_13] : memref<1x9x2x8x12xf32, #tpu.memory_space<vmem>>, vector<1x4x1x8x12xf32>
    %17 = vector.shape_cast %16 : vector<1x4x1x8x12xf32> to vector<4x8x12xf32>
    %18 = vector.shape_cast %17 : vector<4x8x12xf32> to vector<32x12xf32>
    %c1_14 = arith.constant 1 : index
    %c0_15 = arith.constant 0 : index
    %c0_16 = arith.constant 0 : index
    %19 = vector.load %arg3[%c1_14, %c0_15, %c0_16] : memref<3x12x32xf32, #tpu.memory_space<vmem>>, vector<1x12x32xf32>
    %20 = vector.shape_cast %19 : vector<1x12x32xf32> to vector<12x32xf32>
    %cst_17 = arith.constant dense<0.000000e+00> : vector<32x32xf32>
    %21 = tpu.matmul %18, %20, %cst_17 {dimension_numbers = #tpu.dot_dimension_numbers<[1], [0], [0], [1], [0, 0, 1, 1], [], []>} : vector<32x12xf32>, vector<12x32xf32>, vector<32x32xf32> -> vector<32x32xf32>
    %c0_18 = arith.constant 0 : index
    %c0_19 = arith.constant 0 : index
    %22 = vector.load %arg6[%c0_18, %c0_19] : memref<32x32xf32, #tpu.memory_space<vmem>>, vector<32x32xf32>
    %23 = arith.addf %22, %21 : vector<32x32xf32>
    %c0_20 = arith.constant 0 : index
    %c0_21 = arith.constant 0 : index
    %24 = vector.load %arg6[%c0_20, %c0_21] : memref<32x32xf32, #tpu.memory_space<vmem>>, vector<32x32xf32>
    tpu.vector_store %arg6[%c0_20, %c0_21], %23 {strides = array<i32>} : memref<32x32xf32, #tpu.memory_space<vmem>>, vector<32x32xf32>,
    %c1_i32 = arith.constant 1 : i32
    %25 = arith.addi %1, %c1_i32 : i32
    %c0_22 = arith.constant 0 : index
    %26 = arith.index_cast %25 : i32 to index
    %c0_23 = arith.constant 0 : index
    %c0_24 = arith.constant 0 : index
    %c0_25 = arith.constant 0 : index
    %27 = vector.load %arg2[%c0_22, %26, %c0_23, %c0_24, %c0_25] : memref<1x9x2x8x12xf32, #tpu.memory_space<vmem>>, vector<1x4x1x8x12xf32>
    %28 = vector.shape_cast %27 : vector<1x4x1x8x12xf32> to vector<4x8x12xf32>
    %29 = vector.shape_cast %28 : vector<4x8x12xf32> to vector<32x12xf32>
    %c2 = arith.constant 2 : index
    %c0_26 = arith.constant 0 : index
    %c0_27 = arith.constant 0 : index
    %30 = vector.load %arg3[%c2, %c0_26, %c0_27] : memref<3x12x32xf32, #tpu.memory_space<vmem>>, vector<1x12x32xf32>
    %31 = vector.shape_cast %30 : vector<1x12x32xf32> to vector<12x32xf32>
    %cst_28 = arith.constant dense<0.000000e+00> : vector<32x32xf32>
    %32 = tpu.matmul %29, %31, %cst_28 {dimension_numbers = #tpu.dot_dimension_numbers<[1], [0], [0], [1], [0, 0, 1, 1], [], []>} : vector<32x12xf32>, vector<12x32xf32>, vector<32x32xf32> -> vector<32x32xf32>
    %c0_29 = arith.constant 0 : index
    %c0_30 = arith.constant 0 : index
    %33 = vector.load %arg6[%c0_29, %c0_30] : memref<32x32xf32, #tpu.memory_space<vmem>>, vector<32x32xf32>
    %34 = arith.addf %33, %32 : vector<32x32xf32>
    %c0_31 = arith.constant 0 : index
    %c0_32 = arith.constant 0 : index
    %35 = vector.load %arg6[%c0_31, %c0_32] : memref<32x32xf32, #tpu.memory_space<vmem>>, vector<32x32xf32>
    tpu.vector_store %arg6[%c0_31, %c0_32], %34 {strides = array<i32>} : memref<32x32xf32, #tpu.memory_space<vmem>>, vector<32x32xf32>,
    %c0_33 = arith.constant 0 : index
    %c0_34 = arith.constant 0 : index
    %36 = vector.load %arg6[%c0_33, %c0_34] : memref<32x32xf32, #tpu.memory_space<vmem>>, vector<32x32xf32>
    %37 = vector.shape_cast %36 : vector<32x32xf32> to vector<4x8x32xf32>
    %c0_35 = arith.constant 0 : index
    %c0_36 = arith.constant 0 : index
    %c0_37 = arith.constant 0 : index
    %c0_38 = arith.constant 0 : index
    %38 = vector.load %arg5[%c0_35, %c0_36, %c0_37, %c0_38] : memref<1x4x8x32xf32, #tpu.memory_space<vmem>>, vector<1x4x8x32xf32>
    %39 = vector.shape_cast %38 : vector<1x4x8x32xf32> to vector<4x8x32xf32>
    %40 = vector.shape_cast %37 : vector<4x8x32xf32> to vector<1x4x8x32xf32>
    tpu.vector_store %arg5[%c0_35, %c0_36, %c0_37, %c0_38], %40 {strides = array<i32>} : memref<1x4x8x32xf32, #tpu.memory_space<vmem>>, vector<1x4x8x32xf32>,
    return
  }
  func.func @transform_0(%arg0: i32, %arg1: i32) -> (i32, i32, i32, i32, i32) {
    %c0_i32 = arith.constant 0 : i32
    %c0_i32_0 = arith.constant 0 : i32
    %c0_i32_1 = arith.constant 0 : i32
    %c0_i32_2 = arith.constant 0 : i32
    %c0_i32_3 = arith.constant 0 : i32
    return %arg0, %c0_i32, %c0_i32_0, %c0_i32_1, %c0_i32_2 : i32, i32, i32, i32, i32
  }
  func.func @transform_1(%arg0: i32, %arg1: i32) -> (i32, i32, i32) {
    %c0_i32 = arith.constant 0 : i32
    %c0_i32_0 = arith.constant 0 : i32
    %c0_i32_1 = arith.constant 0 : i32
    %c0_i32_2 = arith.constant 0 : i32
    return %c0_i32, %c0_i32_0, %c0_i32_1 : i32, i32, i32
  }
  func.func @transform_2(%arg0: i32, %arg1: i32) -> (i32, i32) {
    %c0_i32 = arith.constant 0 : i32
    %c0_i32_0 = arith.constant 0 : i32
    %c0_i32_1 = arith.constant 0 : i32
    return %c0_i32, %c0_i32_0 : i32, i32
  }
  func.func @transform_3(%arg0: i32, %arg1: i32) -> (i32, i32, i32, i32) {
    %c0_i32 = arith.constant 0 : i32
    %c0_i32_0 = arith.constant 0 : i32
    %c0_i32_1 = arith.constant 0 : i32
    return %arg0, %arg1, %c0_i32, %c0_i32_0 : i32, i32, i32, i32
  }
}

module attributes {stable_mosaic.version = 11 : i64} {
  func.func @kernel(%arg0: i32, %arg1: i32, %arg2: memref<1x9x2x8x12xf32, #tpu.memory_space<vmem>>, %arg3: memref<3x12x32xf32, #tpu.memory_space<vmem>>, %arg4: memref<1x32xf32, #tpu.memory_space<vmem>>, %arg5: memref<1x4x8x32xf32, #tpu.memory_space<vmem>>, %arg6: memref<32x32xf32, #tpu.memory_space<vmem>>) attributes {dimension_semantics = [#tpu.dimension_semantics<parallel>, #tpu.dimension_semantics<parallel>], iteration_bounds = array<i64: 4, 2>, scalar_prefetch = 0 : i64, scratch_operands = 1 : i64, tpu.core_type = #tpu.core_type<tc>, window_params = [{transform_indices = @transform_0, window_bounds = array<i64: 1, 9, 2, 8, 12>}, {pipeline_mode = #tpu.pipeline_mode<synchronous>, transform_indices = @transform_1, window_bounds = array<i64: 3, 12, 32>}, {pipeline_mode = #tpu.pipeline_mode<synchronous>, transform_indices = @transform_2, window_bounds = array<i64: 1, 32>}, {transform_indices = @transform_3, window_bounds = array<i64: 1, 4, 8, 32>}]} {
    %c4_i32 = arith.constant 4 : i32
    %0 = arith.muli %arg1, %c4_i32 : i32
    %1 = tpu.assume_multiple %0, 4 : i32
    %c0_i32 = arith.constant 0 : i32
    %2 = arith.addi %1, %c0_i32 : i32
    %c0 = arith.constant 0 : index
    %3 = arith.index_cast %2 : i32 to index
    %c0_0 = arith.constant 0 : index
    %c0_1 = arith.constant 0 : index
    %c0_2 = arith.constant 0 : index
    %4 = vector.load %arg2[%c0, %3, %c0_0, %c0_1, %c0_2] : memref<1x9x2x8x12xf32, #tpu.memory_space<vmem>>, vector<1x4x1x8x12xf32>
    %5 = vector.shape_cast %4 : vector<1x4x1x8x12xf32> to vector<4x8x12xf32>
    %6 = vector.shape_cast %5 : vector<4x8x12xf32> to vector<32x12xf32>
    %c0_3 = arith.constant 0 : index
    %c0_4 = arith.constant 0 : index
    %c0_5 = arith.constant 0 : index
    %7 = vector.load %arg3[%c0_3, %c0_4, %c0_5] : memref<3x12x32xf32, #tpu.memory_space<vmem>>, vector<1x12x32xf32>
    %8 = vector.shape_cast %7 : vector<1x12x32xf32> to vector<12x32xf32>
    %cst = arith.constant dense<0.000000e+00> : vector<32x32xf32>
    %9 = tpu.matmul %6, %8, %cst {dimension_numbers = #tpu.dot_dimension_numbers<[1], [0], [0], [1], [0, 0, 1, 1], [], []>} : vector<32x12xf32>, vector<12x32xf32>, vector<32x32xf32> -> vector<32x32xf32>
    %c0_6 = arith.constant 0 : index
    %c0_7 = arith.constant 0 : index
    %10 = vector.load %arg4[%c0_6, %c0_7] : memref<1x32xf32, #tpu.memory_space<vmem>>, vector<1x32xf32>
    %11 = vector.broadcast %10 : vector<1x32xf32> to vector<32x32xf32>
    %12 = arith.addf %9, %11 : vector<32x32xf32>
    %c0_8 = arith.constant 0 : index
    %c0_9 = arith.constant 0 : index
    %13 = vector.load %arg6[%c0_8, %c0_9] : memref<32x32xf32, #tpu.memory_space<vmem>>, vector<32x32xf32>
    tpu.vector_store %arg6[%c0_8, %c0_9], %12 {strides = array<i32>} : memref<32x32xf32, #tpu.memory_space<vmem>>, vector<32x32xf32>,
    %c0_i32_10 = arith.constant 0 : i32
    %14 = arith.addi %1, %c0_i32_10 : i32
    %c0_11 = arith.constant 0 : index
    %15 = arith.index_cast %14 : i32 to index
    %c1 = arith.constant 1 : index
    %c0_12 = arith.constant 0 : index
    %c0_13 = arith.constant 0 : index
    %16 = vector.load %arg2[%c0_11, %15, %c1, %c0_12, %c0_13] : memref<1x9x2x8x12xf32, #tpu.memory_space<vmem>>, vector<1x4x1x8x12xf32>
    %17 = vector.shape_cast %16 : vector<1x4x1x8x12xf32> to vector<4x8x12xf32>
    %18 = vector.shape_cast %17 : vector<4x8x12xf32> to vector<32x12xf32>
    %c1_14 = arith.constant 1 : index
    %c0_15 = arith.constant 0 : index
    %c0_16 = arith.constant 0 : index
    %19 = vector.load %arg3[%c1_14, %c0_15, %c0_16] : memref<3x12x32xf32, #tpu.memory_space<vmem>>, vector<1x12x32xf32>
    %20 = vector.shape_cast %19 : vector<1x12x32xf32> to vector<12x32xf32>
    %cst_17 = arith.constant dense<0.000000e+00> : vector<32x32xf32>
    %21 = tpu.matmul %18, %20, %cst_17 {dimension_numbers = #tpu.dot_dimension_numbers<[1], [0], [0], [1], [0, 0, 1, 1], [], []>} : vector<32x12xf32>, vector<12x32xf32>, vector<32x32xf32> -> vector<32x32xf32>
    %c0_18 = arith.constant 0 : index
    %c0_19 = arith.constant 0 : index
    %22 = vector.load %arg6[%c0_18, %c0_19] : memref<32x32xf32, #tpu.memory_space<vmem>>, vector<32x32xf32>
    %23 = arith.addf %22, %21 : vector<32x32xf32>
    %c0_20 = arith.constant 0 : index
    %c0_21 = arith.constant 0 : index
    %24 = vector.load %arg6[%c0_20, %c0_21] : memref<32x32xf32, #tpu.memory_space<vmem>>, vector<32x32xf32>
    tpu.vector_store %arg6[%c0_20, %c0_21], %23 {strides = array<i32>} : memref<32x32xf32, #tpu.memory_space<vmem>>, vector<32x32xf32>,
    %c1_i32 = arith.constant 1 : i32
    %25 = arith.addi %1, %c1_i32 : i32
    %c0_22 = arith.constant 0 : index
    %26 = arith.index_cast %25 : i32 to index
    %c0_23 = arith.constant 0 : index
    %c0_24 = arith.constant 0 : index
    %c0_25 = arith.constant 0 : index
    %27 = vector.load %arg2[%c0_22, %26, %c0_23, %c0_24, %c0_25] : memref<1x9x2x8x12xf32, #tpu.memory_space<vmem>>, vector<1x4x1x8x12xf32>
    %28 = vector.shape_cast %27 : vector<1x4x1x8x12xf32> to vector<4x8x12xf32>
    %29 = vector.shape_cast %28 : vector<4x8x12xf32> to vector<32x12xf32>
    %c2 = arith.constant 2 : index
    %c0_26 = arith.constant 0 : index
    %c0_27 = arith.constant 0 : index
    %30 = vector.load %arg3[%c2, %c0_26, %c0_27] : memref<3x12x32xf32, #tpu.memory_space<vmem>>, vector<1x12x32xf32>
    %31 = vector.shape_cast %30 : vector<1x12x32xf32> to vector<12x32xf32>
    %cst_28 = arith.constant dense<0.000000e+00> : vector<32x32xf32>
    %32 = tpu.matmul %29, %31, %cst_28 {dimension_numbers = #tpu.dot_dimension_numbers<[1], [0], [0], [1], [0, 0, 1, 1], [], []>} : vector<32x12xf32>, vector<12x32xf32>, vector<32x32xf32> -> vector<32x32xf32>
    %c0_29 = arith.constant 0 : index
    %c0_30 = arith.constant 0 : index
    %33 = vector.load %arg6[%c0_29, %c0_30] : memref<32x32xf32, #tpu.memory_space<vmem>>, vector<32x32xf32>
    %34 = arith.addf %33, %32 : vector<32x32xf32>
    %c0_31 = arith.constant 0 : index
    %c0_32 = arith.constant 0 : index
    %35 = vector.load %arg6[%c0_31, %c0_32] : memref<32x32xf32, #tpu.memory_space<vmem>>, vector<32x32xf32>
    tpu.vector_store %arg6[%c0_31, %c0_32], %34 {strides = array<i32>} : memref<32x32xf32, #tpu.memory_space<vmem>>, vector<32x32xf32>,
    %c0_33 = arith.constant 0 : index
    %c0_34 = arith.constant 0 : index
    %36 = vector.load %arg6[%c0_33, %c0_34] : memref<32x32xf32, #tpu.memory_space<vmem>>, vector<32x32xf32>
    %37 = vector.shape_cast %36 : vector<32x32xf32> to vector<4x8x32xf32>
    %c0_35 = arith.constant 0 : index
    %c0_36 = arith.constant 0 : index
    %c0_37 = arith.constant 0 : index
    %c0_38 = arith.constant 0 : index
    %38 = vector.load %arg5[%c0_35, %c0_36, %c0_37, %c0_38] : memref<1x4x8x32xf32, #tpu.memory_space<vmem>>, vector<1x4x8x32xf32>
    %39 = vector.shape_cast %38 : vector<1x4x8x32xf32> to vector<4x8x32xf32>
    %40 = vector.shape_cast %37 : vector<4x8x32xf32> to vector<1x4x8x32xf32>
    tpu.vector_store %arg5[%c0_35, %c0_36, %c0_37, %c0_38], %40 {strides = array<i32>} : memref<1x4x8x32xf32, #tpu.memory_space<vmem>>, vector<1x4x8x32xf32>,
    return
  }
  func.func @transform_0(%arg0: i32, %arg1: i32) -> (i32, i32, i32, i32, i32) {
    %c0_i32 = arith.constant 0 : i32
    %c0_i32_0 = arith.constant 0 : i32
    %c0_i32_1 = arith.constant 0 : i32
    %c0_i32_2 = arith.constant 0 : i32
    %c0_i32_3 = arith.constant 0 : i32
    return %arg0, %c0_i32, %c0_i32_0, %c0_i32_1, %c0_i32_2 : i32, i32, i32, i32, i32
  }
  func.func @transform_1(%arg0: i32, %arg1: i32) -> (i32, i32, i32) {
    %c0_i32 = arith.constant 0 : i32
    %c0_i32_0 = arith.constant 0 : i32
    %c0_i32_1 = arith.constant 0 : i32
    %c0_i32_2 = arith.constant 0 : i32
    return %c0_i32, %c0_i32_0, %c0_i32_1 : i32, i32, i32
  }
  func.func @transform_2(%arg0: i32, %arg1: i32) -> (i32, i32) {
    %c0_i32 = arith.constant 0 : i32
    %c0_i32_0 = arith.constant 0 : i32
    %c0_i32_1 = arith.constant 0 : i32
    return %c0_i32, %c0_i32_0 : i32, i32
  }
  func.func @transform_3(%arg0: i32, %arg1: i32) -> (i32, i32, i32, i32) {
    %c0_i32 = arith.constant 0 : i32
    %c0_i32_0 = arith.constant 0 : i32
    %c0_i32_1 = arith.constant 0 : i32
    return %arg0, %arg1, %c0_i32, %c0_i32_0 : i32, i32, i32, i32
  }
}

</mosaic_0001>

<bundles_post_ra>
// kernel: tpu_custom_call.1
= control target key start
LH: loop header
LB: loop body
LE: loop exit
PB: predicated region body
PF: predicated region fallthrough
CT: control target
= control target key end

     0   :  { %s1501_s0 = inlined_call_operand.hbm [shape: f32[4,9,2,8,12], index: 0, kind: input, shape index: {}]   ;;  %s1502_s1 = inlined_call_operand.hbm [shape: f32[3,12,32], index: 1, kind: input, shape index: {}]   ;;  %s1503_s2 = inlined_call_operand.vmem [shape: f32[1,32], index: 2, kind: input, shape index: {}]   ;;  %s1504_s3 = inlined_call_operand.hbm [shape: f32[4,8,8,32], index: 3, kind: output, shape index: {}]  }
   0x1   :  { %1517 = sst [smem:[#allocation17_spill]] %s1502_s1 }
   0x2   :  { %8 = vsyncpa [#allocation4], 0 }
   0x3   :  { %10 = vsyncpa [#allocation4 + $0x1], 0 }
   0x4   :  { %11 = vsyncpa [#allocation7], 0 }
   0x5   :  { %12 = vsyncpa [#allocation5], 0 }
   0x6   :  { %14 = vsyncpa [#allocation5 + $0x1], 0  ;;  %s1164_s12 = smov 0   ;;  %s1166_s13 = smov 0  }
   0x7   :  { %s1168_s14 = smov 0   ;;  %s1170_s15 = smov 0  }
   0x8   :  { %s1172_s16 = smov 0   ;;  %s1174_s17 = smov 0  }
   0x9   :  { %s1176_s18 = smov 0   ;;  %s1178_s19 = smov 0  }
   0xa   :  { %s1180_s20 = smov 0   ;;  %s1182_s21 = smov 0  }
   0xb   :  { %s1184_s22 = smov 0  }
   0xc LB: > { %1518 = sst [smem:[#allocation12_spill]] %s1094_s12  ;;  %s715_s23 = sadd.s32 4294967295, %s1134_s22   ;;  %s1134_s22 = sphi %s1184_s22, %s20_s22   ;;  %s1130_s21 = sphi %s1182_s21, %s1553_s21   ;;  %s1126_s20 = sphi %s1180_s20, %s1544_s20   ;;  %s1122_s19 = sphi %s1178_s19, %s1552_s19   ;;  %s1118_s18 = sphi %s1176_s18, %s1543_s18   ;;  %s1114_s17 = sphi %s1174_s17, %s1551_s17   ;;  %s1110_s16 = sphi %s1172_s16, %s1550_s16   ;;  %s1106_s15 = sphi %s1170_s15, %s1549_s15   ;;  %s1102_s14 = sphi %s1168_s14, %s1548_s14   ;;  %s1098_s13 = sphi %s1166_s13, %s1547_s13   ;;  %s1094_s12 = sphi %s1164_s12, %s1546_s12  }
   0xd   : > { %1519 = sst [smem:[#allocation13_spill]] %s1126_s20  ;;  %s716_s24 = sadd.s32 4294967294, %s1134_s22  }
   0xe   : > { %p52_p0 = scmp.ne.s32.totalorder %s1110_s16, %s1106_s15  ;;  %p1220_p1 = scmp.eq.s32.totalorder %s715_s23, 0 }
   0xf   : > { %s109_s26 = sadd.s32 1, %s1102_s14  ;;  %p119_p2 = scmp.ne.s32.totalorder %s1102_s14, %s1098_s13 }
  0x10   : > { %s1520_s25 = scalar_select %p1220_p1, 1, 0 }
  0x11   : > { %p1229_p3 = por %p1220_p1, %p52_p0  ;;  %p120_p4 = scmp.eq.s32.totalorder %s715_s23, 7 }
  0x12   : > { %p125_p5 = scmp.ne.s32.totalorder %s1098_s13, %s1094_s12  ;;  %p126_p6 = scmp.eq.s32.totalorder %s716_s24, 7 }
  0x13   : > { %s1521_s27 = scalar_select %p1229_p3, 1, 0 }
  0x14   : > { %p1235_p7 = por %p120_p4, %p119_p2  ;;  %p717_p8 = scmp.ge.s32.totalorder %s1134_s22, 1 }
  0x15   : > { %p1240_p9 = por %p126_p6, %p125_p5  ;;  %p133_p10 = scmp.lt.s32.totalorder %s1134_s22, 9 }
  0x16   : > { %s1522_s28 = scalar_select %p1235_p7, 1, 0 }
  0x17   : > { %s1523_s29 = scalar_select %p1240_p9, 1, 0 }
  0x18   : > { %p1245_p11 = pnand %p717_p8, %p133_p10  ;;  %s1136_s4 = smov [#allocation6]  }
  0x19   : > { %1524 = sst [smem:[#allocation14_spill]] %s1523_s29  ;;  %s145_s5 = sshll.u32 %s1136_s4, 4  ;;  %s146_s5 = int_to_ptr.vmem [resolvable:$true] %s145_s5 }
  0x1a   : > { %s1525_s30 = scalar_select %p1245_p11, 1, 0 }
  0x1b   : > { %p840_p12 = pneg %p1245_p11  ;;  %s1527_s1 = sld [smem:[#allocation17_spill]] }
  0x1d   : > { %p1253_p13 = pnand %p840_p12, %p1220_p1 }
  0x1f   : > { %p952_p2 = pneg %p1253_p13 }
  0x21   : > { %s950_s9 = scalar_lea.hbm %s1527_s1, 768 }
  0x22   : > { %p951_p0 = scmp.ne.s32.totalorder %s1527_s1, %s950_s9  ;;  %p957_p6 = scmp.lt.u32.totalorder %s950_s9, %s1527_s1 }
  0x24   : > { %p953_p4 = pnand %p952_p2, %p951_p0 }
  0x26   : > { %p954_p5 = pneg %p953_p4 }
  0x28   : > { %p959_p8 = pnand %p957_p6, %p954_p5 }
  0x2a   : > { %962 = shalt.err (!%p959_p8)
}
  0x2b   : > { %s963_s24 = scalar_lea.vmem %s146_s5, 768  ;;  %p971_p7 = scmp.lt.s32.totalorder %s146_s5, %s146_s5 }
  0x2c   : > { %p964_p10 = scmp.ne.s32.totalorder %s146_s5, %s963_s24  ;;  %p972_p1 = scmp.lt.s32.totalorder %s963_s24, %s963_s24 }
  0x2e   : > { %p966_p12 = pnand %p964_p10, %p952_p2  ;;  %p973_p3 = por %p972_p1, %p971_p7 }
  0x30   : > { %p967_p9 = pneg %p966_p12 }
  0x32   : > { %p974_p11 = pnand %p973_p3, %p967_p9 }
  0x34   : > { %977 = shalt.err (!%p974_p11)
}
  0x35   : > { %s1510_s4 = smov 128   ;;  %s1511_s7 = smov 8  }
  0x36   : > { %843 = dma.hbm_to_vmem [thread:$0]  (!%p1253_p13), %s1527_s1, 768, %s146_s5, [#allocation7], %s1510_s4, %s1510_s4, %s1511_s7  }
  0x37   : > { %s29_s10 = sadd.s32 1, %s1126_s20  ;;  %s32_s11 = sadd.s32 1, %s1130_s21 }
  0x38   : > { %p30_p1 = scmp.ge.s32.totalorder %s29_s10, 2  ;;  %s39_s15 = sadd.s32 1, %s1114_s17 }
  0x39   : > { %p46_p3 = scmp.ne.s32.totalorder %s1114_s17, %s1110_s16  ;;  %p47_p7 = scmp.eq.s32.totalorder %s1134_s22, 0 }
  0x3a   : > { %s1555_s10 = smov (%p30_p1, %s29_s10), 0  ;;  %s1557_s11 = smov (!%p30_p1, %s32_s11), %s1130_s21 }
  0x3b   : > { %1528 = sst [smem:[#allocation15_spill]] %s1555_s10  ;;  %s105_s6 = ssub.s32 %s1126_s20, %s1555_s10 }
  0x3c   : > { %p34_p9 = scmp.ge.s32.totalorder %s1557_s11, 4  ;;  %p853_p11 = scmp.lt.s32.totalorder %s1134_s22, 8 }
  0x3d   : > { %p1288_p13 = por %p47_p7, %p46_p3  ;;  %s162_s23 = sand.u32 1, %s1114_s17  }
  0x3e   : > { %s1559_s11 = smov (%p34_p9, %s1557_s11), 0  ;;  %s829_s24 = smul.u32 144, %s162_s23 }
  0x3f   : > { %1530 = sst [smem:[#allocation16_spill]] %s1559_s11  ;;  %s36_s8 = ssub.s32 %s1130_s21, %s1559_s11 }
  0x40   : > { %s830_s9 = smul.u32 2304, %s1130_s21  ;;  %p37_p0 = scmp.eq.s32.totalorder %s36_s8, 0 }
  0x41   : > { %s106_s4 = sor.u32 %s105_s6, %s36_s8  ;;  %s166_s12 = scalar_lea.vmem [#allocation3], %s829_s24 }
  0x42   : > { %p107_p2 = scmp.eq.s32.totalorder %s106_s4, 0  ;;  %s1309_s29 = scalar_lea.hbm %s1501_s0, %s830_s9 }
  0x43   : > { %s1299_s7 = scalar_select %p37_p0, %s1114_s17, %s39_s15  }
  0x44   : > { %s1304_s1 = scalar_select %p107_p2, %s1102_s14, %s109_s26  }
  0x45   : > { %s173_s11 = sshll.u32 %s166_s12, 4  ;;  %p1317_p4 = pnand %p853_p11, %p1288_p13  ;;  %s1311_s11 = int_to_ptr.vmem [resolvable:$true] %s173_s11 }
  0x46   : > { %s1321_s26 = scalar_lea.sflag [#allocation4], %s162_s23  ;;  %s978_s20 = scalar_lea.hbm %s1309_s29, 2304 }
  0x47   : > { %p979_p5 = scmp.ne.s32.totalorder %s1309_s29, %s978_s20  ;;  %p980_p6 = pneg %p1317_p4 }
  0x48   : > { %s983_s15 = scalar_lea.hbm %s1501_s0, 9216  ;;  %p984_p12 = scmp.lt.u32.totalorder %s1309_s29, %s1501_s0 }
  0x49   : > { %p981_p8 = pnand %p980_p6, %p979_p5  ;;  %p985_p1 = scmp.lt.u32.totalorder %s983_s15, %s978_s20 }
  0x4a   : > { %p987_p7 = scmp.lt.u32.totalorder %s978_s20, %s1309_s29 }
  0x4b   : > { %p982_p10 = pneg %p981_p8  ;;  %p986_p3 = por %p985_p1, %p984_p12 }
  0x4d   : > { %p988_p9 = por %p987_p7, %p986_p3 }
  0x4f   : > { %p989_p11 = pnand %p988_p9, %p982_p10 }
  0x51   : > { %992 = shalt.err (!%p989_p11)
}
  0x52   : > { %s993_s23 = scalar_lea.vmem %s1311_s11, 2304  ;;  %s1139_s24 = smov [#allocation3]  }
  0x53   : > { %p994_p13 = scmp.ne.s32.totalorder %s1311_s11, %s993_s23  ;;  %s998_s8 = sshll.u32 %s1139_s24, 4  ;;  %s999_s8 = int_to_ptr.vmem [resolvable:$false] %s998_s8 }
  0x54   : > { %s1000_s9 = scalar_lea.vmem %s999_s8, 4608  ;;  %p1001_p5 = scmp.lt.s32.totalorder %s1311_s11, %s999_s8 }
  0x55   : > { %p996_p0 = pnand %p994_p13, %p980_p6  ;;  %p1002_p8 = scmp.lt.s32.totalorder %s1000_s9, %s993_s23 }
  0x57   : > { %p997_p2 = pneg %p996_p0  ;;  %p1003_p12 = por %p1002_p8, %p1001_p5 }
  0x59   : > { %p1004_p1 = pnand %p1003_p12, %p997_p2 }
  0x5b   : > { %1007 = shalt.err (!%p1004_p1)
}
  0x5c   : > { %s1532_s20 = smov 8   ;;  %s1533_s12 = smov 128  }
  0x5d   : > { %847 = dma.hbm_to_vmem [thread:$0]  (!%p1317_p4), %s1309_s29, 2304, %s1311_s11, %s1321_s26, %s1533_s12, %s1533_s12, %s1532_s20  }
  0x5e   : > { %p1534_p6 = scmp.ne.s32.totalorder %s1525_s30, 0 }
  0x5f   : > { %s187_s10 = sand.u32 (!%p1534_p6), 1, %s1110_s16   ;;  %p1535_p10 = scmp.ne.s32.totalorder (!%p1534_p6), %s1521_s27, 0 }
  0x60   : > { %185 = sbr.rel (%p1534_p6) target bundleno = 374 (0x176), region = 32  ;;  %s188_s6 = scalar_lea.sflag (!%p1534_p6), [#allocation4], %s187_s10 }
  0x61   : > { %s831_s15 = smul.u32 (!%p1534_p6), 144, %s187_s10 }
  0x63   : > { %s191_s5 = scalar_lea.vmem (!%p1534_p6), [#allocation3], %s831_s15 }
  0x67   : > { %1081 = dma.done.wait (%p1535_p10), %s188_s6, 2304  }
  0x68   : > { %1083 = vsyncadd (%p1535_p10), %s188_s6, 4294964992  ;;  %p1536_p3 = scmp.ne.s32.totalorder %s1520_s25, 0 }
  0x6a   : > { %1085 = dma.done.wait (%p1536_p3), [#allocation7], 768  }
  0x6b   : > { %1087 = vsyncadd (%p1536_p3), [#allocation7], 4294966528  ;;  %s759_s29 = sshll.u32 %s1118_s18, 6  ;;  %vm248_vm0 = vcmask 1043456   ;;  %vm235_vm1 = vcmask 97280   ;;  %vm1140_vm2 = vmmov 1  }
  0x6c   : > { %s1364_s30 = scalar_lea.vmem %s191_s5, %s759_s29 [#allocation3]  ;;  %vm1366_vm3 = vmpackc.low %vm248_vm0, %vm1140_vm2  ;;  %v226_v1 = vld [vmem:[#allocation6] sm:$0xff]  ;;  %v227_v2 = vld [vmem:[#allocation6 + $0x8] sm:$0xf]  ;;  %vm337_vm4 = vcmask 261120   ;;  %s215_s11 = sand.u32 1, %s1098_s13  }
  0x6d   : > { %v222_v3 = vld [vmem:[%s1364_s30] sm:$0xff]  ;;  %v809_v4 = vpack.c.bf16 %v227_v2, %v226_v1  ;;  %v349_v6 = vld [vmem:[#allocation6 + $0x10] sm:$0xff]  ;;  %v350_v7 = vld [vmem:[#allocation6 + $0x18] sm:$0xf]  ;;  %s723_s4 = sshll.u32 %s215_s11, 5  ;;  %s754_s26 = sshll.u32 %s1118_s18, 2 }
  0x6e   : > { %783 = vmatprep.mubr.msk.f32.mxu0 %vm235_vm1, %v222_v3  ;;  %v224_v5 = vld [vmem:[%s1364_s30 + $0x20] sm:$0xff]  ;;  %v223_v8 = vld [vmem:[%s1364_s30 + $0x10] sm:$0xff]  ;;  %v815_v9 = vpack.c.bf16 %v350_v7, %v349_v6  ;;  %v472_v12 = vld [vmem:[#allocation6 + $0x28] sm:$0xf]  ;;  %s755_s23 = sshll.u32 %s1122_s19, 3  ;;  %s217_s18 = scalar_lea.vmem [#allocation8], %s723_s4 }
  0x6f   : > { %786 = vmatprep.mubr.msk.f32.mxu1 %vm235_vm1, %v224_v5  ;;  %811 = vmatprep.subr.msk.bf16.mxu0 %vm1366_vm3, %v809_v4  ;;  %v225_v10 = vld [vmem:[%s1364_s30 + $0x30] sm:$0xff]  ;;  %v471_v11 = vld [vmem:[#allocation6 + $0x20] sm:$0xff]  ;;  %v733_v13 = vld [vmem:[%s1364_s30 + $0x8] sm:$0xff]  ;;  %s606_s24 = sadd.s32 %s755_s23, %s754_s26  ;;  %s609_s19 = sshll.u32 %s217_s18, 4  ;;  %s1432_s19 = int_to_ptr.vmem [resolvable:$true] %s609_s19 }
  0x70   : > { %827 = vmatprep.subr.msk.bf16.mxu1 %vm1366_vm3, %v809_v4  ;;  %814 = vmatpush3.bf16.msk.msra.mxu0 %vm1366_vm3, %v809_v4  ;;  %v821_v14 = vpack.c.bf16 %v472_v12, %v471_v11  ;;  %v734_v15 = vld [vmem:[%s1364_s30 + $0x18] sm:$0xff]  ;;  %v735_v16 = vld [vmem:[%s1364_s30 + $0x28] sm:$0xff]  ;;  %v747_v18 = vld [vmem:[%s1364_s30 + $0x40] sm:$0xff]  ;;  %s756_s8 = sshll.u32 %s606_s24, 7  ;;  %s1440_s10 = scalar_lea.sflag [#allocation5], %s215_s11 }
  0x71   : > { %828 = vmatpush3.bf16.msk.msra.mxu1 %vm1366_vm3, %v809_v4  ;;  %v736_v17 = vld [vmem:[%s1364_s30 + $0x38] sm:$0xff]  ;;  %v726_v19 = vld [vmem:[%s1503_s2] ss:$0 sm:$0xff]  ;;  %s1430_s12 = scalar_lea.hbm %s1504_s3, %s756_s8  ;;  %s1008_s15 = scalar_lea.vmem %s1432_s19, 512 }
  0x72   : > { %817 = vmatprep.subr.msk.bf16.mxu1 %vm1366_vm3, %v815_v9  ;;  %823 = vmatprep.subr.msk.bf16.mxu0 %vm1366_vm3, %v821_v14  ;;  %p1009_p4 = scmp.ne.s32.totalorder %s1432_s19, %s1008_s15  ;;  %p1539_p7 = scmp.ne.s32.totalorder %s1522_s28, 0 }
  0x73   : > { %784 = vmatmul.mubr.msk.f32.vlgmr.msra.gmra.mrb[0].mxu0 %vm235_vm1, %v223_v8  ;;  %s1141_s6 = smov [#allocation8]  }
  0x74   : > { %787 = vmatmul.mubr.msk.f32.vlgmr.msra.gmra.mrb[0].mxu1 %vm235_vm1, %v225_v10  ;;  %803 = vmatprep.mubr.msk.f32.mxu0 %vm235_vm1, %v223_v8  ;;  %p1010_p9 = pnand %p1009_p4, %p1539_p7  ;;  %s1012_s5 = sshll.u32 %s1141_s6, 4  ;;  %s1013_s5 = int_to_ptr.vmem [resolvable:$false] %s1012_s5 }
  0x75   : > { %820 = vmatpush3.bf16.msk.msra.mxu1 %vm1366_vm3, %v815_v9  ;;  %793 = vmatprep.mubr.msk.f32.mxu1 %vm235_vm1, %v733_v13  ;;  %s1014_s29 = scalar_lea.vmem %s1013_s5, 1024  ;;  %p1015_p13 = scmp.lt.s32.totalorder %s1432_s19, %s1013_s5 }
  0x76   : > { %826 = vmatpush3.bf16.msk.msra.mxu0 %vm1366_vm3, %v821_v14  ;;  %p1011_p11 = pneg %p1010_p9  ;;  %p1016_p0 = scmp.lt.s32.totalorder %s1014_s29, %s1008_s15 }
  0x78   : > { %794 = vmatmul.mubr.msk.f32.vlgmr.msra.gmra.mrb[2].mxu1 %vm235_vm1, %v734_v15  ;;  %p1017_p2 = por %p1016_p0, %p1015_p13 }
  0x79   : > { %796 = vmatprep.mubr.msk.f32.mxu1 %vm235_vm1, %v735_v16  ;;  %804 = vmatmul.mubr.msk.f32.vlgmr.msra.gmra.mrb[2].mxu0 %vm235_vm1, %v224_v5 }
  0x7a   : > { %806 = vmatprep.mubr.msk.f32.mxu0 %vm235_vm1, %v225_v10  ;;  %p1018_p5 = pnand %p1017_p2, %p1011_p11 }
  0x7c   : > { %797 = vmatmul.mubr.msk.f32.gmra.mrb[4].mxu1 %vm235_vm1, %v736_v17 }
  0x7d   : > { %807 = vmatmul.mubr.msk.f32.gmra.mrb[4].mxu0 %vm235_vm1, %v747_v18 }
 0x146   : > { %v785_v20 = vpop.f32.mrb[0].mxu0 }
 0x147   : > { %v788_v21 = vpop.f32.mrb[0].mxu1  ;;  %v324_v22 = vadd.f32 %v785_v20, %v726_v19  ;;  %v318_v24 = vpop.f32.mrb[1].mxu0 }
 0x148   : > { %v334_v23 = vadd.f32 %v788_v21, %v726_v19  ;;  %v328_v25 = vpop.f32.mrb[1].mxu1  ;;  %v319_v26 = vadd.f32 %v726_v19, %v318_v24 }
 0x149   : > { %v329_v27 = vadd.f32 %v726_v19, %v328_v25  ;;  %339 = vst.msk [vmem:[#allocation2 + $0x8] sm:$0xff] %vm337_vm4, %v324_v22 }
 0x14a   : > { %341 = vst.msk [vmem:[#allocation2 + $0x18] sm:$0xff] %vm337_vm4, %v334_v23  ;;  %338 = vst.msk [vmem:[#allocation2] sm:$0xff] %vm337_vm4, %v319_v26 }
 0x14b   : > { %340 = vst.msk [vmem:[#allocation2 + $0x10] sm:$0xff] %vm337_vm4, %v329_v27  ;;  %v795_v28 = vpop.f32.mrb[2].mxu1 }
 0x14c   : > { %v432_v29 = vpop.f32.mrb[3].mxu1  ;;  %v805_v30 = vpop.f32.mrb[2].mxu0 }
 0x14d   : > { %v554_v31 = vpop.f32.mrb[3].mxu0 }
 0x14f   : > { %v798_v32 = vpop.f32.mrb[4].mxu1 }
 0x150   : > { %v442_v33 = vpop.f32.mrb[5].mxu1  ;;  %v452_v34 = vld [vmem:[#allocation2 + $0x8] sm:$0xff]  ;;  %v808_v36 = vpop.f32.mrb[4].mxu0 }
 0x151   : > { %v454_v35 = vld [vmem:[#allocation2 + $0x18] sm:$0xff]  ;;  %v456_v37 = vadd.f32 %v795_v28, %v452_v34  ;;  %v451_v38 = vld [vmem:[#allocation2] sm:$0xff]  ;;  %v564_v41 = vpop.f32.mrb[5].mxu0 }
 0x152   : > { %v458_v39 = vadd.f32 %v798_v32, %v454_v35  ;;  %v453_v40 = vld [vmem:[#allocation2 + $0x10] sm:$0xff]  ;;  %v455_v42 = vadd.f32 %v451_v38, %v432_v29 }
 0x153   : > { %v457_v43 = vadd.f32 %v453_v40, %v442_v33  ;;  %460 = vst.msk [vmem:[#allocation2 + $0x8] sm:$0xff] %vm337_vm4, %v456_v37 }
 0x154   : > { %462 = vst.msk [vmem:[#allocation2 + $0x18] sm:$0xff] %vm337_vm4, %v458_v39  ;;  %459 = vst.msk [vmem:[#allocation2] sm:$0xff] %vm337_vm4, %v455_v42 }
 0x155   : > { %461 = vst.msk [vmem:[#allocation2 + $0x10] sm:$0xff] %vm337_vm4, %v457_v43 }
 0x15a   : > { %v574_v44 = vld [vmem:[#allocation2 + $0x8] sm:$0xff] }
 0x15b   : > { %v576_v45 = vld [vmem:[#allocation2 + $0x18] sm:$0xff]  ;;  %v578_v46 = vadd.f32 %v805_v30, %v574_v44  ;;  %v573_v47 = vld [vmem:[#allocation2] sm:$0xff] }
 0x15c   : > { %v580_v48 = vadd.f32 %v808_v36, %v576_v45  ;;  %v575_v49 = vld [vmem:[#allocation2 + $0x10] sm:$0xff]  ;;  %v577_v50 = vadd.f32 %v573_v47, %v554_v31 }
 0x15d   : > { %v579_v51 = vadd.f32 %v575_v49, %v564_v41  ;;  %582 = vst.msk [vmem:[#allocation2 + $0x8] sm:$0xff] %vm337_vm4, %v578_v46 }
 0x15e   : > { %584 = vst.msk [vmem:[#allocation2 + $0x18] sm:$0xff] %vm337_vm4, %v580_v48  ;;  %581 = vst.msk [vmem:[#allocation2] sm:$0xff] %vm337_vm4, %v577_v50 }
 0x15f   : > { %583 = vst.msk [vmem:[#allocation2 + $0x10] sm:$0xff] %vm337_vm4, %v579_v51 }
 0x164   : > { %v586_v52 = vld [vmem:[#allocation2 + $0x8] sm:$0xff] }
 0x165   : > { %v588_v53 = vld [vmem:[#allocation2 + $0x18] sm:$0xff]  ;;  %v585_v54 = vld [vmem:[#allocation2] sm:$0xff]  ;;  %590 = vst.msk [vmem:[%s217_s18 + $0x8] sm:$0xff] %vm337_vm4, %v586_v52 }
 0x166   : > { %v587_v55 = vld [vmem:[#allocation2 + $0x10] sm:$0xff]  ;;  %592 = vst.msk [vmem:[%s217_s18 + $0x18] sm:$0xff] %vm337_vm4, %v588_v53  ;;  %589 = vst.msk [vmem:[%s217_s18] sm:$0xff] %vm337_vm4, %v585_v54 }
 0x167   : > { %591 = vst.msk [vmem:[%s217_s18 + $0x10] sm:$0xff] %vm337_vm4, %v587_v55 }
 0x168   : > { %1021 = shalt.err (!%p1018_p5)
}
 0x169   : > { %s1022_s30 = scalar_lea.hbm %s1430_s12, 512  ;;  %s1026_s11 = scalar_lea.hbm %s1504_s3, 4096 }
 0x16a   : > { %p1023_p8 = scmp.ne.s32.totalorder %s1430_s12, %s1022_s30  ;;  %p1027_p6 = scmp.lt.u32.totalorder %s1430_s12, %s1504_s3 }
 0x16b   : > { %p1028_p10 = scmp.lt.u32.totalorder %s1026_s11, %s1022_s30  ;;  %p1030_p4 = scmp.lt.u32.totalorder %s1022_s30, %s1430_s12 }
 0x16c   : > { %p1024_p12 = pnand %p1023_p8, %p1539_p7 }
 0x16d   : > { %p1029_p3 = por %p1028_p10, %p1027_p6 }
 0x16e   : > { %p1025_p1 = pneg %p1024_p12 }
 0x16f   : > { %p1031_p9 = por %p1030_p4, %p1029_p3 }
 0x171   : > { %p1032_p11 = pnand %p1031_p9, %p1025_p1 }
 0x173   : > { %1035 = shalt.err (!%p1032_p11)
}
 0x174   : > { %s1142_s23 = smov 128   ;;  %s1143_s24 = smov 8  }
 0x175   : > { %838 = dma.vmem_to_hbm [thread:$0]  (%p1539_p7), %s1432_s19, 512, %s1430_s12, %s1440_s10, %s1142_s23, %s1142_s23, %s1143_s24  }
 0x176 PF: > { %s1540_s8 = sld [smem:[#allocation12_spill]]  ;;  %s1541_s18 = sld [smem:[#allocation14_spill]] }
 0x177   : > { %p855_p13 = scmp.ge.s32.totalorder %s1134_s22, 2 }
 0x17c   : > { %s624_s9 = sand.u32 1, %s1540_s8   ;;  %p1542_p0 = scmp.ne.s32.totalorder %s1541_s18, 0 }
 0x17d   : > { %s625_s20 = scalar_lea.sflag [#allocation5], %s624_s9 }
 0x17e   : > { %p849_p2 = pnand %p855_p13, %p1542_p0 }
 0x180   : > { %1089 = dma.done.wait (!%p849_p2), %s625_s20, 512  }
 0x181   : > { %1091 = vsyncadd (!%p849_p2), %s625_s20, 4294966784  ;;  %s20_s22 = sadd.s32 1, %s1134_s22   ;;  %s1543_s18 = sld [smem:[#allocation13_spill]] }
 0x182   : > { %p17_p5 = scmp.ge.s32.totalorder %s20_s22, 10   ;;  %s1544_s20 = sld [smem:[#allocation15_spill]] }
 0x183   : > { %s1545_s28 = sld [smem:[#allocation16_spill]]  ;;  %s1546_s12 = smov %s1098_s13 }
 0x184   : > { %s1547_s13 = smov %s1102_s14  ;;  %s1548_s14 = smov %s1304_s1 }
 0x185   : > { %s1549_s15 = smov %s1110_s16  ;;  %s1550_s16 = smov %s1114_s17 }
 0x186   : > { %s1551_s17 = smov %s1299_s7  ;;  %s1552_s19 = smov %s1130_s21 }
 0x187   :  { %19 = sbr.rel (!%p17_p5) target bundleno = 12 (0xc), region = 86 }
 0x189   : > { %s1553_s21 = smov %s1545_s28 }
 0x18e   :  { %630 = vsyncpa [#allocation4], 1 }
 0x18f   :  { %632 = vsyncpa [#allocation4 + $0x1], 1 }
 0x190   :  { %633 = vsyncpa [#allocation7], 1 }
 0x191   :  { %634 = vsyncpa [#allocation5], 1 }
 0x192   :  { %636 = vsyncpa [#allocation5 + $0x1], 1 }

// kernel: tpu_custom_call.1
= control target key start
LH: loop header
LB: loop body
LE: loop exit
PB: predicated region body
PF: predicated region fallthrough
CT: control target
= control target key end

     0   :  { %s1501_s0 = inlined_call_operand.hbm [shape: f32[4,9,2,8,12], index: 0, kind: input, shape index: {}]   ;;  %s1502_s1 = inlined_call_operand.hbm [shape: f32[3,12,32], index: 1, kind: input, shape index: {}]   ;;  %s1503_s2 = inlined_call_operand.vmem [shape: f32[1,32], index: 2, kind: input, shape index: {}]   ;;  %s1504_s3 = inlined_call_operand.hbm [shape: f32[4,8,8,32], index: 3, kind: output, shape index: {}]  }
   0x1   :  { %1517 = sst [smem:[#allocation17_spill]] %s1502_s1 }
   0x2   :  { %8 = vsyncpa [#allocation4], 0 }
   0x3   :  { %10 = vsyncpa [#allocation4 + $0x1], 0 }
   0x4   :  { %11 = vsyncpa [#allocation7], 0 }
   0x5   :  { %12 = vsyncpa [#allocation5], 0 }
   0x6   :  { %14 = vsyncpa [#allocation5 + $0x1], 0  ;;  %s1164_s12 = smov 0   ;;  %s1166_s13 = smov 0  }
   0x7   :  { %s1168_s14 = smov 0   ;;  %s1170_s15 = smov 0  }
   0x8   :  { %s1172_s16 = smov 0   ;;  %s1174_s17 = smov 0  }
   0x9   :  { %s1176_s18 = smov 0   ;;  %s1178_s19 = smov 0  }
   0xa   :  { %s1180_s20 = smov 0   ;;  %s1182_s21 = smov 0  }
   0xb   :  { %s1184_s22 = smov 0  }
   0xc LB: > { %1518 = sst [smem:[#allocation12_spill]] %s1094_s12  ;;  %s715_s23 = sadd.s32 4294967295, %s1134_s22   ;;  %s1134_s22 = sphi %s1184_s22, %s20_s22   ;;  %s1130_s21 = sphi %s1182_s21, %s1553_s21   ;;  %s1126_s20 = sphi %s1180_s20, %s1544_s20   ;;  %s1122_s19 = sphi %s1178_s19, %s1552_s19   ;;  %s1118_s18 = sphi %s1176_s18, %s1543_s18   ;;  %s1114_s17 = sphi %s1174_s17, %s1551_s17   ;;  %s1110_s16 = sphi %s1172_s16, %s1550_s16   ;;  %s1106_s15 = sphi %s1170_s15, %s1549_s15   ;;  %s1102_s14 = sphi %s1168_s14, %s1548_s14   ;;  %s1098_s13 = sphi %s1166_s13, %s1547_s13   ;;  %s1094_s12 = sphi %s1164_s12, %s1546_s12  }
   0xd   : > { %1519 = sst [smem:[#allocation13_spill]] %s1126_s20  ;;  %s716_s24 = sadd.s32 4294967294, %s1134_s22  }
   0xe   : > { %p52_p0 = scmp.ne.s32.totalorder %s1110_s16, %s1106_s15  ;;  %p1220_p1 = scmp.eq.s32.totalorder %s715_s23, 0 }
   0xf   : > { %s109_s26 = sadd.s32 1, %s1102_s14  ;;  %p119_p2 = scmp.ne.s32.totalorder %s1102_s14, %s1098_s13 }
  0x10   : > { %s1520_s25 = scalar_select %p1220_p1, 1, 0 }
  0x11   : > { %p1229_p3 = por %p1220_p1, %p52_p0  ;;  %p120_p4 = scmp.eq.s32.totalorder %s715_s23, 7 }
  0x12   : > { %p125_p5 = scmp.ne.s32.totalorder %s1098_s13, %s1094_s12  ;;  %p126_p6 = scmp.eq.s32.totalorder %s716_s24, 7 }
  0x13   : > { %s1521_s27 = scalar_select %p1229_p3, 1, 0 }
  0x14   : > { %p1235_p7 = por %p120_p4, %p119_p2  ;;  %p717_p8 = scmp.ge.s32.totalorder %s1134_s22, 1 }
  0x15   : > { %p1240_p9 = por %p126_p6, %p125_p5  ;;  %p133_p10 = scmp.lt.s32.totalorder %s1134_s22, 9 }
  0x16   : > { %s1522_s28 = scalar_select %p1235_p7, 1, 0 }
  0x17   : > { %s1523_s29 = scalar_select %p1240_p9, 1, 0 }
  0x18   : > { %p1245_p11 = pnand %p717_p8, %p133_p10  ;;  %s1136_s4 = smov [#allocation6]  }
  0x19   : > { %1524 = sst [smem:[#allocation14_spill]] %s1523_s29  ;;  %s145_s5 = sshll.u32 %s1136_s4, 4  ;;  %s146_s5 = int_to_ptr.vmem [resolvable:$true] %s145_s5 }
  0x1a   : > { %s1525_s30 = scalar_select %p1245_p11, 1, 0 }
  0x1b   : > { %p840_p12 = pneg %p1245_p11  ;;  %s1527_s1 = sld [smem:[#allocation17_spill]] }
  0x1d   : > { %p1253_p13 = pnand %p840_p12, %p1220_p1 }
  0x1f   : > { %p952_p2 = pneg %p1253_p13 }
  0x21   : > { %s950_s9 = scalar_lea.hbm %s1527_s1, 768 }
  0x22   : > { %p951_p0 = scmp.ne.s32.totalorder %s1527_s1, %s950_s9  ;;  %p957_p6 = scmp.lt.u32.totalorder %s950_s9, %s1527_s1 }
  0x24   : > { %p953_p4 = pnand %p952_p2, %p951_p0 }
  0x26   : > { %p954_p5 = pneg %p953_p4 }
  0x28   : > { %p959_p8 = pnand %p957_p6, %p954_p5 }
  0x2a   : > { %962 = shalt.err (!%p959_p8)
}
  0x2b   : > { %s963_s24 = scalar_lea.vmem %s146_s5, 768  ;;  %p971_p7 = scmp.lt.s32.totalorder %s146_s5, %s146_s5 }
  0x2c   : > { %p964_p10 = scmp.ne.s32.totalorder %s146_s5, %s963_s24  ;;  %p972_p1 = scmp.lt.s32.totalorder %s963_s24, %s963_s24 }
  0x2e   : > { %p966_p12 = pnand %p964_p10, %p952_p2  ;;  %p973_p3 = por %p972_p1, %p971_p7 }
  0x30   : > { %p967_p9 = pneg %p966_p12 }
  0x32   : > { %p974_p11 = pnand %p973_p3, %p967_p9 }
  0x34   : > { %977 = shalt.err (!%p974_p11)
}
  0x35   : > { %s1510_s4 = smov 128   ;;  %s1511_s7 = smov 8  }
  0x36   : > { %843 = dma.hbm_to_vmem [thread:$0]  (!%p1253_p13), %s1527_s1, 768, %s146_s5, [#allocation7], %s1510_s4, %s1510_s4, %s1511_s7  }
  0x37   : > { %s29_s10 = sadd.s32 1, %s1126_s20  ;;  %s32_s11 = sadd.s32 1, %s1130_s21 }
  0x38   : > { %p30_p1 = scmp.ge.s32.totalorder %s29_s10, 2  ;;  %s39_s15 = sadd.s32 1, %s1114_s17 }
  0x39   : > { %p46_p3 = scmp.ne.s32.totalorder %s1114_s17, %s1110_s16  ;;  %p47_p7 = scmp.eq.s32.totalorder %s1134_s22, 0 }
  0x3a   : > { %s1555_s10 = smov (%p30_p1, %s29_s10), 0  ;;  %s1557_s11 = smov (!%p30_p1, %s32_s11), %s1130_s21 }
  0x3b   : > { %1528 = sst [smem:[#allocation15_spill]] %s1555_s10  ;;  %s105_s6 = ssub.s32 %s1126_s20, %s1555_s10 }
  0x3c   : > { %p34_p9 = scmp.ge.s32.totalorder %s1557_s11, 4  ;;  %p853_p11 = scmp.lt.s32.totalorder %s1134_s22, 8 }
  0x3d   : > { %p1288_p13 = por %p47_p7, %p46_p3  ;;  %s162_s23 = sand.u32 1, %s1114_s17  }
  0x3e   : > { %s1559_s11 = smov (%p34_p9, %s1557_s11), 0  ;;  %s829_s24 = smul.u32 144, %s162_s23 }
  0x3f   : > { %1530 = sst [smem:[#allocation16_spill]] %s1559_s11  ;;  %s36_s8 = ssub.s32 %s1130_s21, %s1559_s11 }
  0x40   : > { %s830_s9 = smul.u32 2304, %s1130_s21  ;;  %p37_p0 = scmp.eq.s32.totalorder %s36_s8, 0 }
  0x41   : > { %s106_s4 = sor.u32 %s105_s6, %s36_s8  ;;  %s166_s12 = scalar_lea.vmem [#allocation3], %s829_s24 }
  0x42   : > { %p107_p2 = scmp.eq.s32.totalorder %s106_s4, 0  ;;  %s1309_s29 = scalar_lea.hbm %s1501_s0, %s830_s9 }
  0x43   : > { %s1299_s7 = scalar_select %p37_p0, %s1114_s17, %s39_s15  }
  0x44   : > { %s1304_s1 = scalar_select %p107_p2, %s1102_s14, %s109_s26  }
  0x45   : > { %s173_s11 = sshll.u32 %s166_s12, 4  ;;  %p1317_p4 = pnand %p853_p11, %p1288_p13  ;;  %s1311_s11 = int_to_ptr.vmem [resolvable:$true] %s173_s11 }
  0x46   : > { %s1321_s26 = scalar_lea.sflag [#allocation4], %s162_s23  ;;  %s978_s20 = scalar_lea.hbm %s1309_s29, 2304 }
  0x47   : > { %p979_p5 = scmp.ne.s32.totalorder %s1309_s29, %s978_s20  ;;  %p980_p6 = pneg %p1317_p4 }
  0x48   : > { %s983_s15 = scalar_lea.hbm %s1501_s0, 9216  ;;  %p984_p12 = scmp.lt.u32.totalorder %s1309_s29, %s1501_s0 }
  0x49   : > { %p981_p8 = pnand %p980_p6, %p979_p5  ;;  %p985_p1 = scmp.lt.u32.totalorder %s983_s15, %s978_s20 }
  0x4a   : > { %p987_p7 = scmp.lt.u32.totalorder %s978_s20, %s1309_s29 }
  0x4b   : > { %p982_p10 = pneg %p981_p8  ;;  %p986_p3 = por %p985_p1, %p984_p12 }
  0x4d   : > { %p988_p9 = por %p987_p7, %p986_p3 }
  0x4f   : > { %p989_p11 = pnand %p988_p9, %p982_p10 }
  0x51   : > { %992 = shalt.err (!%p989_p11)
}
  0x52   : > { %s993_s23 = scalar_lea.vmem %s1311_s11, 2304  ;;  %s1139_s24 = smov [#allocation3]  }
  0x53   : > { %p994_p13 = scmp.ne.s32.totalorder %s1311_s11, %s993_s23  ;;  %s998_s8 = sshll.u32 %s1139_s24, 4  ;;  %s999_s8 = int_to_ptr.vmem [resolvable:$false] %s998_s8 }
  0x54   : > { %s1000_s9 = scalar_lea.vmem %s999_s8, 4608  ;;  %p1001_p5 = scmp.lt.s32.totalorder %s1311_s11, %s999_s8 }
  0x55   : > { %p996_p0 = pnand %p994_p13, %p980_p6  ;;  %p1002_p8 = scmp.lt.s32.totalorder %s1000_s9, %s993_s23 }
  0x57   : > { %p997_p2 = pneg %p996_p0  ;;  %p1003_p12 = por %p1002_p8, %p1001_p5 }
  0x59   : > { %p1004_p1 = pnand %p1003_p12, %p997_p2 }
  0x5b   : > { %1007 = shalt.err (!%p1004_p1)
}
  0x5c   : > { %s1532_s20 = smov 8   ;;  %s1533_s12 = smov 128  }
  0x5d   : > { %847 = dma.hbm_to_vmem [thread:$0]  (!%p1317_p4), %s1309_s29, 2304, %s1311_s11, %s1321_s26, %s1533_s12, %s1533_s12, %s1532_s20  }
  0x5e   : > { %p1534_p6 = scmp.ne.s32.totalorder %s1525_s30, 0 }
  0x5f   : > { %s187_s10 = sand.u32 (!%p1534_p6), 1, %s1110_s16   ;;  %p1535_p10 = scmp.ne.s32.totalorder (!%p1534_p6), %s1521_s27, 0 }
  0x60   : > { %185 = sbr.rel (%p1534_p6) target bundleno = 374 (0x176), region = 32  ;;  %s188_s6 = scalar_lea.sflag (!%p1534_p6), [#allocation4], %s187_s10 }
  0x61   : > { %s831_s15 = smul.u32 (!%p1534_p6), 144, %s187_s10 }
  0x63   : > { %s191_s5 = scalar_lea.vmem (!%p1534_p6), [#allocation3], %s831_s15 }
  0x67   : > { %1081 = dma.done.wait (%p1535_p10), %s188_s6, 2304  }
  0x68   : > { %1083 = vsyncadd (%p1535_p10), %s188_s6, 4294964992  ;;  %p1536_p3 = scmp.ne.s32.totalorder %s1520_s25, 0 }
  0x6a   : > { %1085 = dma.done.wait (%p1536_p3), [#allocation7], 768  }
  0x6b   : > { %1087 = vsyncadd (%p1536_p3), [#allocation7], 4294966528  ;;  %s759_s29 = sshll.u32 %s1118_s18, 6  ;;  %vm248_vm0 = vcmask 1043456   ;;  %vm235_vm1 = vcmask 97280   ;;  %vm1140_vm2 = vmmov 1  }
  0x6c   : > { %s1364_s30 = scalar_lea.vmem %s191_s5, %s759_s29 [#allocation3]  ;;  %vm1366_vm3 = vmpackc.low %vm248_vm0, %vm1140_vm2  ;;  %v226_v1 = vld [vmem:[#allocation6] sm:$0xff]  ;;  %v227_v2 = vld [vmem:[#allocation6 + $0x8] sm:$0xf]  ;;  %vm337_vm4 = vcmask 261120   ;;  %s215_s11 = sand.u32 1, %s1098_s13  }
  0x6d   : > { %v222_v3 = vld [vmem:[%s1364_s30] sm:$0xff]  ;;  %v809_v4 = vpack.c.bf16 %v227_v2, %v226_v1  ;;  %v349_v6 = vld [vmem:[#allocation6 + $0x10] sm:$0xff]  ;;  %v350_v7 = vld [vmem:[#allocation6 + $0x18] sm:$0xf]  ;;  %s723_s4 = sshll.u32 %s215_s11, 5  ;;  %s754_s26 = sshll.u32 %s1118_s18, 2 }
  0x6e   : > { %783 = vmatprep.mubr.msk.f32.mxu0 %vm235_vm1, %v222_v3  ;;  %v224_v5 = vld [vmem:[%s1364_s30 + $0x20] sm:$0xff]  ;;  %v223_v8 = vld [vmem:[%s1364_s30 + $0x10] sm:$0xff]  ;;  %v815_v9 = vpack.c.bf16 %v350_v7, %v349_v6  ;;  %v472_v12 = vld [vmem:[#allocation6 + $0x28] sm:$0xf]  ;;  %s755_s23 = sshll.u32 %s1122_s19, 3  ;;  %s217_s18 = scalar_lea.vmem [#allocation8], %s723_s4 }
  0x6f   : > { %786 = vmatprep.mubr.msk.f32.mxu1 %vm235_vm1, %v224_v5  ;;  %811 = vmatprep.subr.msk.bf16.mxu0 %vm1366_vm3, %v809_v4  ;;  %v225_v10 = vld [vmem:[%s1364_s30 + $0x30] sm:$0xff]  ;;  %v471_v11 = vld [vmem:[#allocation6 + $0x20] sm:$0xff]  ;;  %v733_v13 = vld [vmem:[%s1364_s30 + $0x8] sm:$0xff]  ;;  %s606_s24 = sadd.s32 %s755_s23, %s754_s26  ;;  %s609_s19 = sshll.u32 %s217_s18, 4  ;;  %s1432_s19 = int_to_ptr.vmem [resolvable:$true] %s609_s19 }
  0x70   : > { %827 = vmatprep.subr.msk.bf16.mxu1 %vm1366_vm3, %v809_v4  ;;  %814 = vmatpush3.bf16.msk.msra.mxu0 %vm1366_vm3, %v809_v4  ;;  %v821_v14 = vpack.c.bf16 %v472_v12, %v471_v11  ;;  %v734_v15 = vld [vmem:[%s1364_s30 + $0x18] sm:$0xff]  ;;  %v735_v16 = vld [vmem:[%s1364_s30 + $0x28] sm:$0xff]  ;;  %v747_v18 = vld [vmem:[%s1364_s30 + $0x40] sm:$0xff]  ;;  %s756_s8 = sshll.u32 %s606_s24, 7  ;;  %s1440_s10 = scalar_lea.sflag [#allocation5], %s215_s11 }
  0x71   : > { %828 = vmatpush3.bf16.msk.msra.mxu1 %vm1366_vm3, %v809_v4  ;;  %v736_v17 = vld [vmem:[%s1364_s30 + $0x38] sm:$0xff]  ;;  %v726_v19 = vld [vmem:[%s1503_s2] ss:$0 sm:$0xff]  ;;  %s1430_s12 = scalar_lea.hbm %s1504_s3, %s756_s8  ;;  %s1008_s15 = scalar_lea.vmem %s1432_s19, 512 }
  0x72   : > { %817 = vmatprep.subr.msk.bf16.mxu1 %vm1366_vm3, %v815_v9  ;;  %823 = vmatprep.subr.msk.bf16.mxu0 %vm1366_vm3, %v821_v14  ;;  %p1009_p4 = scmp.ne.s32.totalorder %s1432_s19, %s1008_s15  ;;  %p1539_p7 = scmp.ne.s32.totalorder %s1522_s28, 0 }
  0x73   : > { %784 = vmatmul.mubr.msk.f32.vlgmr.msra.gmra.mrb[0].mxu0 %vm235_vm1, %v223_v8  ;;  %s1141_s6 = smov [#allocation8]  }
  0x74   : > { %787 = vmatmul.mubr.msk.f32.vlgmr.msra.gmra.mrb[0].mxu1 %vm235_vm1, %v225_v10  ;;  %803 = vmatprep.mubr.msk.f32.mxu0 %vm235_vm1, %v223_v8  ;;  %p1010_p9 = pnand %p1009_p4, %p1539_p7  ;;  %s1012_s5 = sshll.u32 %s1141_s6, 4  ;;  %s1013_s5 = int_to_ptr.vmem [resolvable:$false] %s1012_s5 }
  0x75   : > { %820 = vmatpush3.bf16.msk.msra.mxu1 %vm1366_vm3, %v815_v9  ;;  %793 = vmatprep.mubr.msk.f32.mxu1 %vm235_vm1, %v733_v13  ;;  %s1014_s29 = scalar_lea.vmem %s1013_s5, 1024  ;;  %p1015_p13 = scmp.lt.s32.totalorder %s1432_s19, %s1013_s5 }
  0x76   : > { %826 = vmatpush3.bf16.msk.msra.mxu0 %vm1366_vm3, %v821_v14  ;;  %p1011_p11 = pneg %p1010_p9  ;;  %p1016_p0 = scmp.lt.s32.totalorder %s1014_s29, %s1008_s15 }
  0x78   : > { %794 = vmatmul.mubr.msk.f32.vlgmr.msra.gmra.mrb[2].mxu1 %vm235_vm1, %v734_v15  ;;  %p1017_p2 = por %p1016_p0, %p1015_p13 }
  0x79   : > { %796 = vmatprep.mubr.msk.f32.mxu1 %vm235_vm1, %v735_v16  ;;  %804 = vmatmul.mubr.msk.f32.vlgmr.msra.gmra.mrb[2].mxu0 %vm235_vm1, %v224_v5 }
  0x7a   : > { %806 = vmatprep.mubr.msk.f32.mxu0 %vm235_vm1, %v225_v10  ;;  %p1018_p5 = pnand %p1017_p2, %p1011_p11 }
  0x7c   : > { %797 = vmatmul.mubr.msk.f32.gmra.mrb[4].mxu1 %vm235_vm1, %v736_v17 }
  0x7d   : > { %807 = vmatmul.mubr.msk.f32.gmra.mrb[4].mxu0 %vm235_vm1, %v747_v18 }
 0x146   : > { %v785_v20 = vpop.f32.mrb[0].mxu0 }
 0x147   : > { %v788_v21 = vpop.f32.mrb[0].mxu1  ;;  %v324_v22 = vadd.f32 %v785_v20, %v726_v19  ;;  %v318_v24 = vpop.f32.mrb[1].mxu0 }
 0x148   : > { %v334_v23 = vadd.f32 %v788_v21, %v726_v19  ;;  %v328_v25 = vpop.f32.mrb[1].mxu1  ;;  %v319_v26 = vadd.f32 %v726_v19, %v318_v24 }
 0x149   : > { %v329_v27 = vadd.f32 %v726_v19, %v328_v25  ;;  %339 = vst.msk [vmem:[#allocation2 + $0x8] sm:$0xff] %vm337_vm4, %v324_v22 }
 0x14a   : > { %341 = vst.msk [vmem:[#allocation2 + $0x18] sm:$0xff] %vm337_vm4, %v334_v23  ;;  %338 = vst.msk [vmem:[#allocation2] sm:$0xff] %vm337_vm4, %v319_v26 }
 0x14b   : > { %340 = vst.msk [vmem:[#allocation2 + $0x10] sm:$0xff] %vm337_vm4, %v329_v27  ;;  %v795_v28 = vpop.f32.mrb[2].mxu1 }
 0x14c   : > { %v432_v29 = vpop.f32.mrb[3].mxu1  ;;  %v805_v30 = vpop.f32.mrb[2].mxu0 }
 0x14d   : > { %v554_v31 = vpop.f32.mrb[3].mxu0 }
 0x14f   : > { %v798_v32 = vpop.f32.mrb[4].mxu1 }
 0x150   : > { %v442_v33 = vpop.f32.mrb[5].mxu1  ;;  %v452_v34 = vld [vmem:[#allocation2 + $0x8] sm:$0xff]  ;;  %v808_v36 = vpop.f32.mrb[4].mxu0 }
 0x151   : > { %v454_v35 = vld [vmem:[#allocation2 + $0x18] sm:$0xff]  ;;  %v456_v37 = vadd.f32 %v795_v28, %v452_v34  ;;  %v451_v38 = vld [vmem:[#allocation2] sm:$0xff]  ;;  %v564_v41 = vpop.f32.mrb[5].mxu0 }
 0x152   : > { %v458_v39 = vadd.f32 %v798_v32, %v454_v35  ;;  %v453_v40 = vld [vmem:[#allocation2 + $0x10] sm:$0xff]  ;;  %v455_v42 = vadd.f32 %v451_v38, %v432_v29 }
 0x153   : > { %v457_v43 = vadd.f32 %v453_v40, %v442_v33  ;;  %460 = vst.msk [vmem:[#allocation2 + $0x8] sm:$0xff] %vm337_vm4, %v456_v37 }
 0x154   : > { %462 = vst.msk [vmem:[#allocation2 + $0x18] sm:$0xff] %vm337_vm4, %v458_v39  ;;  %459 = vst.msk [vmem:[#allocation2] sm:$0xff] %vm337_vm4, %v455_v42 }
 0x155   : > { %461 = vst.msk [vmem:[#allocation2 + $0x10] sm:$0xff] %vm337_vm4, %v457_v43 }
 0x15a   : > { %v574_v44 = vld [vmem:[#allocation2 + $0x8] sm:$0xff] }
 0x15b   : > { %v576_v45 = vld [vmem:[#allocation2 + $0x18] sm:$0xff]  ;;  %v578_v46 = vadd.f32 %v805_v30, %v574_v44  ;;  %v573_v47 = vld [vmem:[#allocation2] sm:$0xff] }
 0x15c   : > { %v580_v48 = vadd.f32 %v808_v36, %v576_v45  ;;  %v575_v49 = vld [vmem:[#allocation2 + $0x10] sm:$0xff]  ;;  %v577_v50 = vadd.f32 %v573_v47, %v554_v31 }
 0x15d   : > { %v579_v51 = vadd.f32 %v575_v49, %v564_v41  ;;  %582 = vst.msk [vmem:[#allocation2 + $0x8] sm:$0xff] %vm337_vm4, %v578_v46 }
 0x15e   : > { %584 = vst.msk [vmem:[#allocation2 + $0x18] sm:$0xff] %vm337_vm4, %v580_v48  ;;  %581 = vst.msk [vmem:[#allocation2] sm:$0xff] %vm337_vm4, %v577_v50 }
 0x15f   : > { %583 = vst.msk [vmem:[#allocation2 + $0x10] sm:$0xff] %vm337_vm4, %v579_v51 }
 0x164   : > { %v586_v52 = vld [vmem:[#allocation2 + $0x8] sm:$0xff] }
 0x165   : > { %v588_v53 = vld [vmem:[#allocation2 + $0x18] sm:$0xff]  ;;  %v585_v54 = vld [vmem:[#allocation2] sm:$0xff]  ;;  %590 = vst.msk [vmem:[%s217_s18 + $0x8] sm:$0xff] %vm337_vm4, %v586_v52 }
 0x166   : > { %v587_v55 = vld [vmem:[#allocation2 + $0x10] sm:$0xff]  ;;  %592 = vst.msk [vmem:[%s217_s18 + $0x18] sm:$0xff] %vm337_vm4, %v588_v53  ;;  %589 = vst.msk [vmem:[%s217_s18] sm:$0xff] %vm337_vm4, %v585_v54 }
 0x167   : > { %591 = vst.msk [vmem:[%s217_s18 + $0x10] sm:$0xff] %vm337_vm4, %v587_v55 }
 0x168   : > { %1021 = shalt.err (!%p1018_p5)
}
 0x169   : > { %s1022_s30 = scalar_lea.hbm %s1430_s12, 512  ;;  %s1026_s11 = scalar_lea.hbm %s1504_s3, 4096 }
 0x16a   : > { %p1023_p8 = scmp.ne.s32.totalorder %s1430_s12, %s1022_s30  ;;  %p1027_p6 = scmp.lt.u32.totalorder %s1430_s12, %s1504_s3 }
 0x16b   : > { %p1028_p10 = scmp.lt.u32.totalorder %s1026_s11, %s1022_s30  ;;  %p1030_p4 = scmp.lt.u32.totalorder %s1022_s30, %s1430_s12 }
 0x16c   : > { %p1024_p12 = pnand %p1023_p8, %p1539_p7 }
 0x16d   : > { %p1029_p3 = por %p1028_p10, %p1027_p6 }
 0x16e   : > { %p1025_p1 = pneg %p1024_p12 }
 0x16f   : > { %p1031_p9 = por %p1030_p4, %p1029_p3 }
 0x171   : > { %p1032_p11 = pnand %p1031_p9, %p1025_p1 }
 0x173   : > { %1035 = shalt.err (!%p1032_p11)
}
 0x174   : > { %s1142_s23 = smov 128   ;;  %s1143_s24 = smov 8  }
 0x175   : > { %838 = dma.vmem_to_hbm [thread:$0]  (%p1539_p7), %s1432_s19, 512, %s1430_s12, %s1440_s10, %s1142_s23, %s1142_s23, %s1143_s24  }
 0x176 PF: > { %s1540_s8 = sld [smem:[#allocation12_spill]]  ;;  %s1541_s18 = sld [smem:[#allocation14_spill]] }
 0x177   : > { %p855_p13 = scmp.ge.s32.totalorder %s1134_s22, 2 }
 0x17c   : > { %s624_s9 = sand.u32 1, %s1540_s8   ;;  %p1542_p0 = scmp.ne.s32.totalorder %s1541_s18, 0 }
 0x17d   : > { %s625_s20 = scalar_lea.sflag [#allocation5], %s624_s9 }
 0x17e   : > { %p849_p2 = pnand %p855_p13, %p1542_p0 }
 0x180   : > { %1089 = dma.done.wait (!%p849_p2), %s625_s20, 512  }
 0x181   : > { %1091 = vsyncadd (!%p849_p2), %s625_s20, 4294966784  ;;  %s20_s22 = sadd.s32 1, %s1134_s22   ;;  %s1543_s18 = sld [smem:[#allocation13_spill]] }
 0x182   : > { %p17_p5 = scmp.ge.s32.totalorder %s20_s22, 10   ;;  %s1544_s20 = sld [smem:[#allocation15_spill]] }
 0x183   : > { %s1545_s28 = sld [smem:[#allocation16_spill]]  ;;  %s1546_s12 = smov %s1098_s13 }
 0x184   : > { %s1547_s13 = smov %s1102_s14  ;;  %s1548_s14 = smov %s1304_s1 }
 0x185   : > { %s1549_s15 = smov %s1110_s16  ;;  %s1550_s16 = smov %s1114_s17 }
 0x186   : > { %s1551_s17 = smov %s1299_s7  ;;  %s1552_s19 = smov %s1130_s21 }
 0x187   :  { %19 = sbr.rel (!%p17_p5) target bundleno = 12 (0xc), region = 86 }
 0x189   : > { %s1553_s21 = smov %s1545_s28 }
 0x18e   :  { %630 = vsyncpa [#allocation4], 1 }
 0x18f   :  { %632 = vsyncpa [#allocation4 + $0x1], 1 }
 0x190   :  { %633 = vsyncpa [#allocation7], 1 }
 0x191   :  { %634 = vsyncpa [#allocation5], 1 }
 0x192   :  { %636 = vsyncpa [#allocation5 + $0x1], 1 }

</bundles_post_ra>
